<compile_context>
chip_gen: v6e
topology: v6e:2x2x1
jax: 0.10.0
libtpu: 0.0.40
codegen_flags: <defaults>
</compile_context>

<pallas_src>
import jax
import jax.numpy as jnp
from jax.experimental import pallas as pl
from jax.experimental.pallas import tpu as pltpu


def _mlp_score_kernel(xi_ref, xj_ref,
                      w1a_ref, w1b_ref, b1_ref,
                      w2_ref, b2_ref,
                      w3_ref, b3_ref,
                      out_ref):
    # operator == 'cat' realised as a split first matmul:
    #   cat(x_i, x_j) @ W1 == x_i @ W1[:D] + x_j @ W1[D:]
    h = (jnp.dot(xi_ref[...], w1a_ref[...], preferred_element_type=jnp.float32)
         + jnp.dot(xj_ref[...], w1b_ref[...], preferred_element_type=jnp.float32)
         + b1_ref[...])
    h = jnp.maximum(h, 0.0)                      # ReLU (dropout = identity, eval)

    # Layer 2: Linear + ReLU (f32 weights; h already f32 in VMEM, no HBM cost)
    h = jnp.dot(h, w2_ref[...], preferred_element_type=jnp.float32) + b2_ref[...]
    h = jnp.maximum(h, 0.0)

    # Output layer: Linear + sigmoid
    y = jnp.dot(h, w3_ref[...], preferred_element_type=jnp.float32) + b3_ref[...]
    out_ref[...] = jax.nn.sigmoid(y)


def mlp_score(x_i, x_j, params, *, tile_n=4096):
    """Fused MLPScore forward.  x_i, x_j: (N, D) float32 embeddings."""
    w1, b1, w2, b2, w3, b3 = params
    N, D = x_i.shape
    out_dim = w3.shape[1]

    # Stream embeddings as bf16 (halves HBM read bytes); split + cast W1.
    xi_bf = x_i.astype(jnp.bfloat16)
    xj_bf = x_j.astype(jnp.bfloat16)
    w1a = w1[:D, :].astype(jnp.bfloat16)
    w1b = w1[D:, :].astype(jnp.bfloat16)

    # Row-axis padding: multiple of 16 (bf16 sublane packing) and of tile_n.
    n_min = max(16, ((N + 15) // 16) * 16)
    tile_n = min(tile_n, n_min)
    n_pad = ((N + tile_n - 1) // tile_n) * tile_n
    if n_pad != N:
        pad = ((0, n_pad - N), (0, 0))
        xi_bf = jnp.pad(xi_bf, pad)
        xj_bf = jnp.pad(xj_bf, pad)

    grid = (n_pad // tile_n,)

    row_spec = pl.BlockSpec((tile_n, D), lambda i: (i, 0))
    const = lambda shape: pl.BlockSpec(shape, lambda i: (0, 0))

    out = pl.pallas_call(
        _mlp_score_kernel,
        out_shape=jax.ShapeDtypeStruct((n_pad, out_dim), jnp.float32),
        grid=grid,
        in_specs=[
            row_spec, row_spec,                                     # x_i, x_j tiles
            const(w1a.shape), const(w1b.shape), const(b1.shape),    # layer 1
            const(w2.shape), const(b2.shape),                       # layer 2
            const(w3.shape), const(b3.shape),                       # output layer
        ],
        out_specs=pl.BlockSpec((tile_n, out_dim), lambda i: (i, 0)),
        compiler_params=pltpu.CompilerParams(
            dimension_semantics=("parallel",)),
    )(xi_bf, xj_bf, w1a, w1b, b1, w2, b2, w3, b3)

    return out[:N]


def init_params(key, in_channels, hidden, out_channels):
    """Deterministic synthetic parameters (shapes match the PyTorch module)."""
    ks = jax.random.split(key, 6)
    scale = 0.1
    w1 = scale * jax.random.normal(ks[0], (in_channels, hidden), jnp.float32)
    b1 = scale * jax.random.normal(ks[1], (1, hidden), jnp.float32)
    w2 = scale * jax.random.normal(ks[2], (hidden, hidden), jnp.float32)
    b2 = scale * jax.random.normal(ks[3], (1, hidden), jnp.float32)
    w3 = scale * jax.random.normal(ks[4], (hidden, out_channels), jnp.float32)
    b3 = scale * jax.random.normal(ks[5], (1, out_channels), jnp.float32)
    return (w1, b1, w2, b2, w3, b3)


def mlp_score_ref(x_i, x_j, params):
    """Pure-JAX f32 reference of the PyTorch forward (eval mode)."""
    w1, b1, w2, b2, w3, b3 = params
    x = jnp.concatenate([x_i, x_j], axis=-1)
    h = jnp.maximum(x @ w1 + b1, 0.0)
    h = jnp.maximum(h @ w2 + b2, 0.0)
    return jax.nn.sigmoid(h @ w3 + b3)


if __name__ == "__main__":
    # Small shapes consistent with the module.
    embed_dim = 16     # args.embed_dim
    hidden = 32        # args.hidden_predictor
    out_channels = 1   # args.outdim_predictor
    in_channels = embed_dim * 2   # operator == 'cat', net != 'DGCN'

    key = jax.random.PRNGKey(0)
    k_xi, k_xj, k_p, k_xi2, k_xj2 = jax.random.split(key, 5)
    params = init_params(k_p, in_channels, hidden, out_channels)

    # Case 1: tiny batch (single padded tile).
    N = 8
    x_i = jax.random.normal(k_xi, (N, embed_dim), jnp.float32)
    x_j = jax.random.normal(k_xj, (N, embed_dim), jnp.float32)
    out = jax.block_until_ready(mlp_score(x_i, x_j, params))
    ref = mlp_score_ref(x_i, x_j, params)
    assert out.shape == (N, out_channels)
    # bf16 input streaming -> loosened tolerance vs. the f32 reference.
    assert jnp.allclose(out, ref, atol=1e-2, rtol=1e-2)

    # Case 2: exercises the multi-tile grid + tail padding path.
    N2 = 40
    x_i2 = jax.random.normal(k_xi2, (N2, embed_dim), jnp.float32)
    x_j2 = jax.random.normal(k_xj2, (N2, embed_dim), jnp.float32)
    out2 = jax.block_until_ready(mlp_score(x_i2, x_j2, params, tile_n=16))
    ref2 = mlp_score_ref(x_i2, x_j2, params)
    assert out2.shape == (N2, out_channels)
    assert jnp.allclose(out2, ref2, atol=1e-2, rtol=1e-2)

    print("KERNEL_OK")
</pallas_src>

<mosaic_0001>
module attributes {stable_mosaic.version = 11 : i64} {
  func.func @_mlp_score_kernel(%arg0: i32, %arg1: memref<16x16xbf16, #tpu.memory_space<vmem>>, %arg2: memref<16x16xbf16, #tpu.memory_space<vmem>>, %arg3: memref<16x32xbf16, #tpu.memory_space<vmem>>, %arg4: memref<16x32xbf16, #tpu.memory_space<vmem>>, %arg5: memref<1x32xf32, #tpu.memory_space<vmem>>, %arg6: memref<32x32xf32, #tpu.memory_space<vmem>>, %arg7: memref<1x32xf32, #tpu.memory_space<vmem>>, %arg8: memref<32x1xf32, #tpu.memory_space<vmem>>, %arg9: memref<1x1xf32, #tpu.memory_space<vmem>>, %arg10: memref<16x1xf32, #tpu.memory_space<vmem>>) attributes {dimension_semantics = [#tpu.dimension_semantics<parallel>], iteration_bounds = array<i64: 1>, scalar_prefetch = 0 : i64, scratch_operands = 0 : i64, tpu.core_type = #tpu.core_type<tc>, window_params = [{transform_indices = @transform_0, window_bounds = array<i64: 16, 16>}, {transform_indices = @transform_1, window_bounds = array<i64: 16, 16>}, {pipeline_mode = #tpu.pipeline_mode<synchronous>, transform_indices = @transform_2, window_bounds = array<i64: 16, 32>}, {pipeline_mode = #tpu.pipeline_mode<synchronous>, transform_indices = @transform_3, window_bounds = array<i64: 16, 32>}, {pipeline_mode = #tpu.pipeline_mode<synchronous>, transform_indices = @transform_4, window_bounds = array<i64: 1, 32>}, {pipeline_mode = #tpu.pipeline_mode<synchronous>, transform_indices = @transform_5, window_bounds = array<i64: 32, 32>}, {pipeline_mode = #tpu.pipeline_mode<synchronous>, transform_indices = @transform_6, window_bounds = array<i64: 1, 32>}, {pipeline_mode = #tpu.pipeline_mode<synchronous>, transform_indices = @transform_7, window_bounds = array<i64: 32, 1>}, {pipeline_mode = #tpu.pipeline_mode<synchronous>, transform_indices = @transform_8, window_bounds = array<i64: 1, 1>}, {transform_indices = @transform_9, window_bounds = array<i64: 16, 1>}]} {
    %c0 = arith.constant 0 : index
    %c0_0 = arith.constant 0 : index
    %0 = vector.load %arg1[%c0, %c0_0] : memref<16x16xbf16, #tpu.memory_space<vmem>>, vector<16x16xbf16>
    %c0_1 = arith.constant 0 : index
    %c0_2 = arith.constant 0 : index
    %1 = vector.load %arg3[%c0_1, %c0_2] : memref<16x32xbf16, #tpu.memory_space<vmem>>, vector<16x32xbf16>
    %cst = arith.constant dense<0.000000e+00> : vector<16x32xf32>
    %2 = tpu.matmul %0, %1, %cst {dimension_numbers = #tpu.dot_dimension_numbers<[1], [0], [0], [1], [0, 0, 1, 1], [], []>} : vector<16x16xbf16>, vector<16x32xbf16>, vector<16x32xf32> -> vector<16x32xf32>
    %c0_3 = arith.constant 0 : index
    %c0_4 = arith.constant 0 : index
    %3 = vector.load %arg2[%c0_3, %c0_4] : memref<16x16xbf16, #tpu.memory_space<vmem>>, vector<16x16xbf16>
    %c0_5 = arith.constant 0 : index
    %c0_6 = arith.constant 0 : index
    %4 = vector.load %arg4[%c0_5, %c0_6] : memref<16x32xbf16, #tpu.memory_space<vmem>>, vector<16x32xbf16>
    %cst_7 = arith.constant dense<0.000000e+00> : vector<16x32xf32>
    %5 = tpu.matmul %3, %4, %cst_7 {dimension_numbers = #tpu.dot_dimension_numbers<[1], [0], [0], [1], [0, 0, 1, 1], [], []>} : vector<16x16xbf16>, vector<16x32xbf16>, vector<16x32xf32> -> vector<16x32xf32>
    %6 = arith.addf %2, %5 : vector<16x32xf32>
    %c0_8 = arith.constant 0 : index
    %c0_9 = arith.constant 0 : index
    %7 = vector.load %arg5[%c0_8, %c0_9] : memref<1x32xf32, #tpu.memory_space<vmem>>, vector<1x32xf32>
    %8 = vector.broadcast %7 : vector<1x32xf32> to vector<16x32xf32>
    %9 = arith.addf %6, %8 : vector<16x32xf32>
    %cst_10 = arith.constant 0.000000e+00 : f32
    %10 = vector.broadcast %cst_10 : f32 to vector<16x32xf32>
    %11 = arith.maximumf %9, %10 : vector<16x32xf32>
    %c0_11 = arith.constant 0 : index
    %c0_12 = arith.constant 0 : index
    %12 = vector.load %arg6[%c0_11, %c0_12] : memref<32x32xf32, #tpu.memory_space<vmem>>, vector<32x32xf32>
    %cst_13 = arith.constant dense<0.000000e+00> : vector<16x32xf32>
    %13 = tpu.matmul %11, %12, %cst_13 {dimension_numbers = #tpu.dot_dimension_numbers<[1], [0], [0], [1], [0, 0, 1, 1], [], []>} : vector<16x32xf32>, vector<32x32xf32>, vector<16x32xf32> -> vector<16x32xf32>
    %c0_14 = arith.constant 0 : index
    %c0_15 = arith.constant 0 : index
    %14 = vector.load %arg7[%c0_14, %c0_15] : memref<1x32xf32, #tpu.memory_space<vmem>>, vector<1x32xf32>
    %15 = vector.broadcast %14 : vector<1x32xf32> to vector<16x32xf32>
    %16 = arith.addf %13, %15 : vector<16x32xf32>
    %cst_16 = arith.constant 0.000000e+00 : f32
    %17 = vector.broadcast %cst_16 : f32 to vector<16x32xf32>
    %18 = arith.maximumf %16, %17 : vector<16x32xf32>
    %c0_17 = arith.constant 0 : index
    %c0_18 = arith.constant 0 : index
    %19 = vector.load %arg8[%c0_17, %c0_18] : memref<32x1xf32, #tpu.memory_space<vmem>>, vector<32x1xf32>
    %cst_19 = arith.constant dense<0.000000e+00> : vector<16x1xf32>
    %20 = tpu.matmul %18, %19, %cst_19 {dimension_numbers = #tpu.dot_dimension_numbers<[1], [0], [0], [1], [0, 0, 1, 1], [], []>} : vector<16x32xf32>, vector<32x1xf32>, vector<16x1xf32> -> vector<16x1xf32>
    %c0_20 = arith.constant 0 : index
    %c0_21 = arith.constant 0 : index
    %21 = vector.load %arg9[%c0_20, %c0_21] : memref<1x1xf32, #tpu.memory_space<vmem>>, vector<1x1xf32>
    %22 = vector.broadcast %21 : vector<1x1xf32> to vector<16x1xf32>
    %23 = arith.addf %20, %22 : vector<16x1xf32>
    %24 = arith.negf %23 : vector<16x1xf32>
    %25 = math.exp %24 : vector<16x1xf32>
    %cst_22 = arith.constant 1.000000e+00 : f32
    %26 = vector.broadcast %cst_22 : f32 to vector<16x1xf32>
    %27 = arith.addf %26, %25 : vector<16x1xf32>
    %28 = arith.divf %26, %27 : vector<16x1xf32>
    %c0_23 = arith.constant 0 : index
    %c0_24 = arith.constant 0 : index
    %29 = vector.load %arg10[%c0_23, %c0_24] : memref<16x1xf32, #tpu.memory_space<vmem>>, vector<16x1xf32>
    tpu.vector_store %arg10[%c0_23, %c0_24], %28 {strides = array<i32>} : memref<16x1xf32, #tpu.memory_space<vmem>>, vector<16x1xf32>,
    return
  }
  func.func @transform_0(%arg0: i32) -> (i32, i32) {
    %c0_i32 = arith.constant 0 : i32
    %c0_i32_0 = arith.constant 0 : i32
    return %arg0, %c0_i32 : i32, i32
  }
  func.func @transform_1(%arg0: i32) -> (i32, i32) {
    %c0_i32 = arith.constant 0 : i32
    %c0_i32_0 = arith.constant 0 : i32
    return %arg0, %c0_i32 : i32, i32
  }
  func.func @transform_2(%arg0: i32) -> (i32, i32) {
    %c0_i32 = arith.constant 0 : i32
    %c0_i32_0 = arith.constant 0 : i32
    %c0_i32_1 = arith.constant 0 : i32
    return %c0_i32, %c0_i32_0 : i32, i32
  }
  func.func @transform_3(%arg0: i32) -> (i32, i32) {
    %c0_i32 = arith.constant 0 : i32
    %c0_i32_0 = arith.constant 0 : i32
    %c0_i32_1 = arith.constant 0 : i32
    return %c0_i32, %c0_i32_0 : i32, i32
  }
  func.func @transform_4(%arg0: i32) -> (i32, i32) {
    %c0_i32 = arith.constant 0 : i32
    %c0_i32_0 = arith.constant 0 : i32
    %c0_i32_1 = arith.constant 0 : i32
    return %c0_i32, %c0_i32_0 : i32, i32
  }
  func.func @transform_5(%arg0: i32) -> (i32, i32) {
    %c0_i32 = arith.constant 0 : i32
    %c0_i32_0 = arith.constant 0 : i32
    %c0_i32_1 = arith.constant 0 : i32
    return %c0_i32, %c0_i32_0 : i32, i32
  }
  func.func @transform_6(%arg0: i32) -> (i32, i32) {
    %c0_i32 = arith.constant 0 : i32
    %c0_i32_0 = arith.constant 0 : i32
    %c0_i32_1 = arith.constant 0 : i32
    return %c0_i32, %c0_i32_0 : i32, i32
  }
  func.func @transform_7(%arg0: i32) -> (i32, i32) {
    %c0_i32 = arith.constant 0 : i32
    %c0_i32_0 = arith.constant 0 : i32
    %c0_i32_1 = arith.constant 0 : i32
    return %c0_i32, %c0_i32_0 : i32, i32
  }
  func.func @transform_8(%arg0: i32) -> (i32, i32) {
    %c0_i32 = arith.constant 0 : i32
    %c0_i32_0 = arith.constant 0 : i32
    %c0_i32_1 = arith.constant 0 : i32
    return %c0_i32, %c0_i32_0 : i32, i32
  }
  func.func @transform_9(%arg0: i32) -> (i32, i32) {
    %c0_i32 = arith.constant 0 : i32
    %c0_i32_0 = arith.constant 0 : i32
    return %arg0, %c0_i32 : i32, i32
  }
}

</mosaic_0001>

<bundles_post_ra>
// kernel: tpu_custom_call.1
= control target key start
LH: loop header
LB: loop body
LE: loop exit
PB: predicated region body
PF: predicated region fallthrough
CT: control target
= control target key end

     0   :  { %s674_s0 = inlined_call_operand.vmem [shape: bf16[16,16], index: 0, kind: input, shape index: {}]   ;;  %s675_s1 = inlined_call_operand.hbm [shape: bf16[16,16], index: 1, kind: input, shape index: {}]   ;;  %s676_s2 = inlined_call_operand.hbm [shape: bf16[16,32], index: 2, kind: input, shape index: {}]   ;;  %s677_s3 = inlined_call_operand.hbm [shape: bf16[16,32], index: 3, kind: input, shape index: {}]   ;;  %s678_s4 = inlined_call_operand.vmem [shape: f32[1,32], index: 4, kind: input, shape index: {}]   ;;  %s679_s5 = inlined_call_operand.vmem [shape: f32[32,32], index: 5, kind: input, shape index: {}]   ;;  %s680_s6 = inlined_call_operand.vmem [shape: f32[1,32], index: 6, kind: input, shape index: {}]   ;;  %s681_s7 = inlined_call_operand.vmem [shape: f32[32,1], index: 7, kind: input, shape index: {}]   ;;  %s682_s8 = inlined_call_operand.<no memory space> [shape: f32[1,1], index: 8, kind: input, shape index: {}]   ;;  %s683_s9 = inlined_call_operand.vmem [shape: f32[16,1], index: 9, kind: output, shape index: {}]  }
   0x1   :  { %v14_v0 = vstv %s682_s8 }
   0x2   :  { %15 = vst [vmem:[#allocation2] sm:$0x1] %v14_v0 }
   0x3   :  { %16 = vsyncpa [#allocation4], 0 }
   0x4   :  { %17 = vsyncpa [#allocation6], 0  ;;  %s562_s11 = smov [#allocation5]   ;;  %s563_s13 = smov [#allocation3]  }
   0x5   :  { %s37_s12 = sshll.u32 %s562_s11, 4  ;;  %s25_s14 = sshll.u32 %s563_s13, 4  ;;  %s38_s12 = int_to_ptr.vmem [resolvable:$true] %s37_s12  ;;  %s26_s14 = int_to_ptr.vmem [resolvable:$true] %s25_s14 }
   0x6   :  { %s506_s15 = scalar_lea.vmem %s38_s12, 128  ;;  %p511_p1 = scmp.lt.s32.totalorder %s38_s12, %s38_s12 }
   0x7   :  { %p507_p0 = scmp.ne.s32.totalorder %s38_s12, %s506_s15  ;;  %p512_p2 = scmp.lt.s32.totalorder %s506_s15, %s506_s15 }
   0x9   :  { %p513_p3 = por %p512_p2, %p511_p1 }
   0xb   :  { %p514_p4 = pnand %p513_p3, %p507_p0 }
   0xd   :  { %517 = shalt.err (!%p514_p4)
}
   0xe   :  { %s564_s16 = smov 64   ;;  %s565_s17 = smov 4  }
   0xf   :  { %43 = dma.hbm_to_vmem [thread:$0]  %s676_s2, 128, %s38_s12, [#allocation6], %s564_s16, %s564_s16, %s565_s17  }
  0x10   :  { %s526_s19 = scalar_lea.vmem %s26_s14, 128  ;;  %p531_p6 = scmp.lt.s32.totalorder %s26_s14, %s26_s14 }
  0x11   :  { %p527_p5 = scmp.ne.s32.totalorder %s26_s14, %s526_s19  ;;  %p532_p7 = scmp.lt.s32.totalorder %s526_s19, %s526_s19 }
  0x13   :  { %p533_p8 = por %p532_p7, %p531_p6 }
  0x15   :  { %p534_p9 = pnand %p533_p8, %p527_p5 }
  0x17   :  { %537 = shalt.err (!%p534_p9)
}
  0x18   :  { %31 = dma.hbm_to_vmem [thread:$0]  %s675_s1, 128, %s26_s14, [#allocation4], %s564_s16, %s564_s16, %s565_s17  }
  0x19   :  { %s566_s22 = smov [#allocation7]  }
  0x1a   :  { %s49_s23 = sshll.u32 %s566_s22, 4  ;;  %s50_s23 = int_to_ptr.vmem [resolvable:$true] %s49_s23 }
  0x1b   :  { %s546_s24 = scalar_lea.vmem %s50_s23, 128  ;;  %p551_p11 = scmp.lt.s32.totalorder %s50_s23, %s50_s23 }
  0x1c   :  { %p547_p10 = scmp.ne.s32.totalorder %s50_s23, %s546_s24  ;;  %p552_p12 = scmp.lt.s32.totalorder %s546_s24, %s546_s24 }
  0x1e   :  { %p553_p13 = por %p552_p12, %p551_p11 }
  0x20   :  { %p554_p0 = pnand %p553_p13, %p547_p10 }
  0x22   :  { %557 = shalt.err (!%p554_p0)
}
  0x23   :  { %55 = dma.hbm_to_vmem [thread:$0]  %s677_s3, 128, %s50_s23, [#allocation6], %s564_s16, %s564_s16, %s565_s17  }
  0x24   :  { %558 = dma.done.wait [#allocation4], 128  }
  0x25   :  { %559 = vsyncadd [#allocation4], 4294967168 }
  0x26   :  { %560 = dma.done.wait [#allocation6], 256  }
  0x27   :  { %561 = vsyncadd [#allocation6], 4294967040  ;;  %v567_v1 = vmov 0.0   ;;  %vm568_vm0 = vmmov 0   ;;  %v486_v2 = vld [vmem:[#allocation7] sm:$0xff]   ;;  %v487_v3 = vld [vmem:[#allocation5] sm:$0xff]  }
  0x28   :  { %445 = vmatprep.subr.bf16.mxu0 %v567_v1  ;;  %451 = vmatprep.subr.bf16.mxu1 %v567_v1  ;;  %v488_v4 = vld [vmem:[#allocation3] sm:$0xff]   ;;  %vm95_vm1 = vcmask 130048   ;;  %v209_v6 = vld [vmem:[%s679_s5 + $0x18] sm:$0xff]  ;;  %v208_v7 = vld [vmem:[%s679_s5 + $0x10] sm:$0xff]  ;;  %vm217_vm2 = vcmask 261120   ;;  %vm405_vm3 = vcmask 7168  }
  0x29   :  { %447 = vmatprep.mubr.msk.bf16.mxu0 %vm568_vm0, %v567_v1  ;;  %453 = vmatprep.mubr.msk.bf16.mxu1 %vm568_vm0, %v567_v1  ;;  %v489_v5 = vld [vmem:[%s674_s0] sm:$0xff]   ;;  %v207_v8 = vld [vmem:[%s679_s5 + $0x8] sm:$0xff]  ;;  %v304_v10 = vld [vmem:[%s681_s7 + $0x18] sm:$0xff] }
  0x2a   :  { %446 = vmatpush3.bf16.msra.mxu0 %v486_v2  ;;  %452 = vmatpush3.bf16.msra.mxu1 %v487_v3  ;;  %v206_v9 = vld [vmem:[%s679_s5] sm:$0xff]  ;;  %v303_v26 = vld [vmem:[%s681_s7 + $0x10] sm:$0xff]  ;;  %v302_v27 = vld [vmem:[%s681_s7 + $0x8] sm:$0xff] }
  0x2b   :  { %457 = vmatprep.subr.mxu0 %v209_v6  ;;  %468 = vmatprep.subr.mxu1 %v304_v10  ;;  %v420_v13 = vld [vmem:[%s678_s4] ss:$0 sm:$0xff] }
  0x2c   :  { %v301_v28 = vld [vmem:[%s681_s7] sm:$0xff] }
  0x2d   :  { %448 = vmatmul.mubr.msk.bf16.vlgmr.msra.gmra.mxu0 %vm95_vm1, %v488_v4  ;;  %454 = vmatmul.mubr.msk.bf16.vlgmr.msra.gmra.mxu1 %vm95_vm1, %v489_v5  ;;  %v421_v29 = vld [vmem:[%s680_s6] ss:$0 sm:$0xff] }
  0x2e   :  { %458 = vmatpush3.msra.mxu0 %v209_v6  ;;  %469 = vmatpush3.msra.mxu1 %v304_v10  ;;  %v424_v36 = vld [vmem:[#allocation2] ss:$0 sm:$0xff] }
  0x2f   :  { %459 = vmatprep.subr.mxu0 %v208_v7  ;;  %470 = vmatprep.subr.mxu1 %v303_v26 }
  0x30   :  { %460 = vmatpush3.msra.mxu0 %v208_v7  ;;  %471 = vmatpush3.msra.mxu1 %v303_v26 }
  0x31   :  { %461 = vmatprep.subr.mxu0 %v207_v8  ;;  %472 = vmatprep.subr.mxu1 %v302_v27 }
  0x32   :  { %462 = vmatpush3.msra.mxu0 %v207_v8  ;;  %473 = vmatpush3.msra.mxu1 %v302_v27 }
  0x33   :  { %463 = vmatprep.subr.mxu0 %v206_v9  ;;  %474 = vmatprep.subr.mxu1 %v301_v28 }
  0x34   :  { %464 = vmatpush3.msra.mxu0 %v206_v9  ;;  %475 = vmatpush3.msra.mxu1 %v301_v28 }
  0xed   :  { %v133_v11 = vpop.f32.mrf.mxu0  ;;  %v188_v12 = vpop.f32.mrf.mxu1 }
  0xee   :  { %v189_v14 = vadd.f32 %v188_v12, %v133_v11 }
  0xef   :  { %v449_v15 = vpop.f32.mrf.mxu0  ;;  %v455_v16 = vpop.f32.mrf.mxu1 }
  0xf0   :  { %v202_v17 = vadd.f32 %v420_v13, %v189_v14 }
  0xf1   :  { %v136_v18 = vpop.f32.mrf.mxu0  ;;  %v191_v19 = vpop.f32.mrf.mxu1 }
  0xf2   :  { %v204_v20 = vmax.f32 %v202_v17, 0.0  ;;  %v192_v21 = vadd.f32 %v191_v19, %v136_v18 }
  0xf3   :  { %v450_v22 = vpop.f32.mrf.mxu0  ;;  %v456_v23 = vpop.f32.mrf.mxu1 }
  0xf4   :  { %v203_v24 = vadd.f32 %v420_v13, %v192_v21  ;;  %465 = vmatprep.mubr.msk.f32.mxu0 %vm217_vm2, %v204_v20 }
  0xf6   :  { %v205_v25 = vmax.f32 %v203_v24, 0.0 }
  0xf8   :  { %466 = vmatmul.mubr.msk.f32.vlgmr.msra.gmra.mxu0 %vm217_vm2, %v205_v25 }
 0x1b8   :  { %v467_v30 = vpop.f32.mrf.mxu0 }
 0x1b9   :  { %v296_v31 = vadd.f32 %v467_v30, %v421_v29 }
 0x1ba   :  { %v290_v32 = vpop.f32.mrf.mxu0 }
 0x1bb   :  { %v291_v33 = vadd.f32 %v421_v29, %v290_v32  ;;  %v300_v35 = vmax.f32 %v296_v31, 0.0 }
 0x1bd   :  { %v299_v34 = vmax.f32 %v291_v33, 0.0 }
 0x1bf   :  { %476 = vmatprep.mubr.msk.f32.mxu1 %vm217_vm2, %v299_v34 }
 0x1c0   :  { %477 = vmatmul.mubr.msk.f32.vlgmr.msra.gmra.mxu1 %vm217_vm2, %v300_v35 }
 0x280   :  { %v478_v37 = vpop.f32.mrf.mxu1 }
 0x281   :  { %v390_v38 = vadd.f32 %v478_v37, %v424_v36 }
 0x282   :  { %v384_v39 = vpop.f32.mrf.mxu1 }
 0x283   :  { %v428_v40 = vmul.f32 -1.442695, %v390_v38  ;;  %v385_v41 = vadd.f32 %v424_v36, %v384_v39 }
 0x285   :  { %490 = vpow2.f32 %v428_v40  ;;  %v427_v42 = vmul.f32 -1.442695, %v385_v41 }
 0x287   :  { %492 = vpow2.f32 %v427_v42 }
 0x292   :  { %v491_v43 = vpop.eup %490 }
 0x293   :  { %v400_v44 = vadd.f32 1.0, %v491_v43 }
 0x294   :  { %v493_v45 = vpop.eup %492 }
 0x295   :  { %494 = vrcp.f32 %v400_v44  ;;  %v399_v46 = vadd.f32 1.0, %v493_v45 }
 0x297   :  { %496 = vrcp.f32 %v399_v46 }
 0x2a2   :  { %v495_v47 = vpop.eup %494 }
 0x2a3   :  { %407 = vst.msk [vmem:[%s683_s9 + $0x8] sm:$0xff] %vm405_vm3, %v495_v47 }
 0x2a4   :  { %v497_v48 = vpop.eup %496 }
 0x2a5   :  { %406 = vst.msk [vmem:[%s683_s9] sm:$0xff] %vm405_vm3, %v497_v48 }
 0x2a6   :  { %412 = vsyncpa [#allocation4], 1 }
 0x2a7   :  { %413 = vsyncpa [#allocation6], 1 }

</bundles_post_ra>
